<compile_context>
chip_gen: v5e
topology: v5e:2x2
jax: 0.10.0
libtpu: 0.0.40
codegen_flags: <defaults>
</compile_context>

<pallas_src>
import functools
import math

import jax
import jax.numpy as jnp
from jax.experimental import pallas as pl
from jax.experimental.pallas import tpu as pltpu

_INV_SQRT2 = 1.0 / math.sqrt(2.0)


# ----------------------------------------------------------------------------- 
# Kernels
# -----------------------------------------------------------------------------
def _mlp_kernel_resident(x_ref, w1t_ref, b1_ref, w2t_ref, b2_ref, o_ref):
    # Whole W1^T / W2^T resident in VMEM; one M tile per grid step.
    # x_ref: (tm, dim) bf16; w1t_ref: (dim, hid) bf16; w2t_ref: (hid, dim) bf16.
    h = jnp.dot(x_ref[...], w1t_ref[...], preferred_element_type=jnp.float32)
    h = h + b1_ref[...]
    # Exact GELU (erf form, matches torch.nn.GELU default), f32 math.
    h = 0.5 * h * (1.0 + jax.lax.erf(h * _INV_SQRT2))
    # do1: Dropout -- identity in eval mode.
    y = jnp.dot(h.astype(w2t_ref.dtype), w2t_ref[...],
                preferred_element_type=jnp.float32)
    # do2: Dropout -- identity in eval mode.
    o_ref[...] = (y + b2_ref[...]).astype(o_ref.dtype)


def _mlp_kernel_streamed(x_ref, w1t_ref, b1_ref, w2t_ref, b2_ref, o_ref, acc_ref):
    # Hidden axis streamed in (dim, tk)/(tk, dim) chunks; f32 accumulator
    # resident across the k grid axis.
    k = pl.program_id(1)

    @pl.when(k == 0)
    def _init():
        acc_ref[...] = jnp.zeros_like(acc_ref)

    h = jnp.dot(x_ref[...], w1t_ref[...], preferred_element_type=jnp.float32)
    h = h + b1_ref[...]
    h = 0.5 * h * (1.0 + jax.lax.erf(h * _INV_SQRT2))
    # do1: Dropout -- identity in eval mode.
    # TODO(synk): training-mode dropout (pltpu.prng_* mask) not implemented.

    acc_ref[...] += jnp.dot(h.astype(w2t_ref.dtype), w2t_ref[...],
                            preferred_element_type=jnp.float32)

    @pl.when(k == pl.num_programs(1) - 1)
    def _finalize():
        # b2 added exactly once; do2 is identity in eval mode.
        o_ref[...] = (acc_ref[...] + b2_ref[...]).astype(o_ref.dtype)


# ----------------------------------------------------------------------------- 
# Wrapper / tiling logic
# -----------------------------------------------------------------------------
def _round_up(x, m):
    return (x + m - 1) // m * m


def _tpu_config():
    """Trace-time hardware query: (vmem_capacity, lane alignment, tm target, 2-TC?)."""
    kind = ""
    try:
        kind = jax.devices()[0].device_kind.lower()
    except Exception:
        pass
    vmem_cap = None
    try:
        vmem_cap = int(pltpu.get_tpu_info().vmem_capacity_bytes)
    except Exception:
        vmem_cap = None
    if vmem_cap is None or vmem_cap <= 0:
        vmem_cap = (64 if "v7" in kind else 128) * 1024 * 1024
    two_cores = "v7" in kind                      # v7x: 2 TensorCores / chip
    align = 128 if "v5" in kind else 256          # v6e/v7x MXU is 256 wide
    tm_target = 1024 if "v6" in kind else 512     # compute-bound tm per review
    return vmem_cap, align, tm_target, two_cores


@functools.partial(jax.jit, static_argnames=("force_stream", "tk_max"))
def mlp_block(x, w1, b1, w2, b2, *, force_stream=False, tk_max=2048):
    """Fused MLP forward.

    x: (M, dim).  Weights in PyTorch nn.Linear layout:
      w1: (hidden, dim), b1: (hidden,), w2: (dim, hidden), b2: (dim,).
    Returns (M, dim) in x.dtype.
    """
    M, dim = x.shape
    hidden = w1.shape[0]
    out_dtype = x.dtype
    out_bytes = jnp.dtype(out_dtype).itemsize

    vmem_cap, align, tm_target, two_cores = _tpu_config()
    vmem_limit = min(int(0.85 * vmem_cap), vmem_cap - 4 * 1024 * 1024)
    budget = vmem_limit - 2 * 1024 * 1024         # headroom for compiler scratch

    dim_p = _round_up(dim, align)
    hid_p = _round_up(hidden, align)

    # --- token-tile sizing: minimize M padding for the chosen tile count -----
    def tm_for(n_tiles):
        return max(16, _round_up(-(-M // n_tiles), 16))

    n_m = max(1, -(-M // tm_target))
    if two_cores and n_m == 1 and M >= 32:
        n_m = 2                                   # use both v7x TensorCores
    tm_eff = tm_for(n_m)

    # --- VMEM cost models (inputs/outputs double-buffered by the pipeline) ---
    def resident_bytes(tm):
        w = 2 * dim_p * hid_p * 2                 # W1^T + W2^T, bf16
        xo = tm * dim_p * (2 + out_bytes)         # x tile + out tile
        h = tm * hid_p * (4 + 2)                  # f32 intermediate + bf16 cast
        return 2 * (w + xo) + h + 4 * (hid_p + dim_p) * 4

    def streamed_bytes(tm, tk):
        w = 2 * dim_p * tk * 2                    # W1^T / W2^T chunks, bf16
        xo = tm * dim_p * (2 + out_bytes)
        acc = tm * dim_p * 4
        h = tm * tk * (4 + 2)
        return 2 * (w + xo) + acc + h + 4 * (tk + dim_p) * 4

    def tk_candidates():
        n = hid_p // align
        divs = sorted({d for d in range(1, n + 1) if n % d == 0}, reverse=True)
        cands = [d * align for d in divs if d * align <= max(tk_max, align)]
        return cands or [align]

    mode, tk_eff = None, None
    for _ in range(32):
        if (not force_stream) and resident_bytes(tm_eff) <= budget:
            mode = "resident"
            break
        for tk_c in tk_candidates():
            if streamed_bytes(tm_eff, tk_c) <= budget:
                mode, tk_eff = "streamed", tk_c
                break
        if mode is not None:
            break
        if tm_eff <= 16:
            mode, tk_eff = "streamed", align      # best effort
            break
        n_m *= 2
        tm_eff = tm_for(n_m)
    if mode is None:
        mode, tk_eff = "streamed", align
    m_p = tm_eff * n_m

    # --- one-time layout plumbing: pad, pre-transpose, cast MXU operands -----
    def pad2(a, rows, cols, dtype):
        a = a.astype(dtype)
        if a.shape == (rows, cols):
            return a
        return jnp.zeros((rows, cols), dtype).at[:a.shape[0], :a.shape[1]].set(a)

    x_p = pad2(x, m_p, dim_p, jnp.bfloat16)
    w1t = pad2(w1.T, dim_p, hid_p, jnp.bfloat16)
    w2t = pad2(w2.T, hid_p, dim_p, jnp.bfloat16)
    b1_p = pad2(b1.reshape(1, hidden), 1, hid_p, jnp.float32)
    b2_p = pad2(b2.reshape(1, dim), 1, dim_p, jnp.float32)

    if mode == "resident":
        out_p = pl.pallas_call(
            _mlp_kernel_resident,
            out_shape=jax.ShapeDtypeStruct((m_p, dim_p), out_dtype),
            grid_spec=pltpu.PrefetchScalarGridSpec(
                num_scalar_prefetch=0,
                grid=(n_m,),
                in_specs=[
                    pl.BlockSpec((tm_eff, dim_p), lambda i: (i, 0)),   # x tile
                    pl.BlockSpec((dim_p, hid_p), lambda i: (0, 0)),    # W1^T (resident)
                    pl.BlockSpec((1, hid_p), lambda i: (0, 0)),        # b1
                    pl.BlockSpec((hid_p, dim_p), lambda i: (0, 0)),    # W2^T (resident)
                    pl.BlockSpec((1, dim_p), lambda i: (0, 0)),        # b2
                ],
                out_specs=pl.BlockSpec((tm_eff, dim_p), lambda i: (i, 0)),
            ),
            compiler_params=pltpu.CompilerParams(
                dimension_semantics=("parallel",),
                vmem_limit_bytes=int(vmem_limit),
            ),
        )(x_p, w1t, b1_p, w2t, b2_p)
    else:
        n_k = hid_p // tk_eff
        out_p = pl.pallas_call(
            _mlp_kernel_streamed,
            out_shape=jax.ShapeDtypeStruct((m_p, dim_p), out_dtype),
            grid_spec=pltpu.PrefetchScalarGridSpec(
                num_scalar_prefetch=0,
                grid=(n_m, n_k),
                in_specs=[
                    pl.BlockSpec((tm_eff, dim_p), lambda i, k: (i, 0)),  # x tile
                    pl.BlockSpec((dim_p, tk_eff), lambda i, k: (0, k)),  # W1^T chunk
                    pl.BlockSpec((1, tk_eff), lambda i, k: (0, k)),      # b1 chunk
                    pl.BlockSpec((tk_eff, dim_p), lambda i, k: (k, 0)),  # W2^T chunk
                    pl.BlockSpec((1, dim_p), lambda i, k: (0, 0)),       # b2
                ],
                out_specs=pl.BlockSpec((tm_eff, dim_p), lambda i, k: (i, 0)),
                scratch_shapes=[pltpu.VMEM((tm_eff, dim_p), jnp.float32)],
            ),
            compiler_params=pltpu.CompilerParams(
                dimension_semantics=("parallel", "arbitrary"),
                vmem_limit_bytes=int(vmem_limit),
            ),
        )(x_p, w1t, b1_p, w2t, b2_p)

    return out_p[:M, :dim]


# ----------------------------------------------------------------------------- 
# Reference / init (matching the PyTorch module)
# -----------------------------------------------------------------------------
def _xavier_uniform(key, shape):
    # shape = (out_features, in_features), gain = 1.0 (PyTorch default).
    fan_out, fan_in = shape
    bound = math.sqrt(6.0 / (fan_in + fan_out))
    return jax.random.uniform(key, shape, jnp.float32, minval=-bound, maxval=bound)


def init_mlp_params(key, dim, hidden_dim):
    k1, k2, k3, k4 = jax.random.split(key, 4)
    w1 = _xavier_uniform(k1, (hidden_dim, dim))
    b1 = jax.random.normal(k2, (hidden_dim,), jnp.float32) * 1e-6
    w2 = _xavier_uniform(k3, (dim, hidden_dim))
    b2 = jax.random.normal(k4, (dim,), jnp.float32) * 1e-6
    return w1, b1, w2, b2


def mlp_ref(x, w1, b1, w2, b2):
    h = x @ w1.T + b1
    h = 0.5 * h * (1.0 + jax.lax.erf(h / math.sqrt(2.0)))
    return h @ w2.T + b2


if __name__ == "__main__":
    key = jax.random.PRNGKey(0)
    kx, kp, kx2, kp2 = jax.random.split(key, 4)

    # Test 1: tiny shapes matching the module's intended use -> weights-resident path.
    batch, seq, dim, hidden_dim = 2, 8, 32, 64
    x = jax.random.normal(kx, (batch, seq, dim), jnp.float32)
    w1, b1, w2, b2 = init_mlp_params(kp, dim, hidden_dim)

    x2d = x.reshape(batch * seq, dim)
    out = jax.block_until_ready(mlp_block(x2d, w1, b1, w2, b2))
    ref = mlp_ref(x2d, w1, b1, w2, b2)
    assert out.shape == x2d.shape
    # bf16 MXU operands with f32 accumulation -> bf16-level tolerance vs f32 ref.
    assert jnp.allclose(out, ref, atol=5e-2, rtol=5e-2), "resident path mismatch"
    assert out.reshape(batch, seq, dim).shape == (batch, seq, dim)

    # Test 2: force the streamed (hidden-chunked) path, including M padding and
    # multiple k steps, so that code path is exercised on every chip generation.
    dim2, hidden2, m2 = 128, 512, 40
    xb = jax.random.normal(kx2, (m2, dim2), jnp.float32)
    w1b, b1b, w2b, b2b = init_mlp_params(kp2, dim2, hidden2)
    out_b = jax.block_until_ready(
        mlp_block(xb, w1b, b1b, w2b, b2b, force_stream=True, tk_max=256))
    ref_b = mlp_ref(xb, w1b, b1b, w2b, b2b)
    assert jnp.allclose(out_b, ref_b, atol=5e-2, rtol=5e-2), "streamed path mismatch"

    print("KERNEL_OK")
</pallas_src>

<mosaic_0001>
module attributes {stable_mosaic.version = 11 : i64} {
  func.func @_mlp_kernel_resident(%arg0: i32, %arg1: memref<16x256xbf16, #tpu.memory_space<vmem>>, %arg2: memref<256x256xbf16, #tpu.memory_space<vmem>>, %arg3: memref<1x256xf32, #tpu.memory_space<vmem>>, %arg4: memref<256x256xbf16, #tpu.memory_space<vmem>>, %arg5: memref<1x256xf32, #tpu.memory_space<vmem>>, %arg6: memref<16x256xf32, #tpu.memory_space<vmem>>) attributes {dimension_semantics = [#tpu.dimension_semantics<parallel>], iteration_bounds = array<i64: 1>, scalar_prefetch = 0 : i64, scratch_operands = 0 : i64, tpu.core_type = #tpu.core_type<tc>, window_params = [{transform_indices = @transform_0, window_bounds = array<i64: 16, 256>}, {pipeline_mode = #tpu.pipeline_mode<synchronous>, transform_indices = @transform_1, window_bounds = array<i64: 256, 256>}, {pipeline_mode = #tpu.pipeline_mode<synchronous>, transform_indices = @transform_2, window_bounds = array<i64: 1, 256>}, {pipeline_mode = #tpu.pipeline_mode<synchronous>, transform_indices = @transform_3, window_bounds = array<i64: 256, 256>}, {pipeline_mode = #tpu.pipeline_mode<synchronous>, transform_indices = @transform_4, window_bounds = array<i64: 1, 256>}, {transform_indices = @transform_5, window_bounds = array<i64: 16, 256>}]} {
    %c0 = arith.constant 0 : index
    %c0_0 = arith.constant 0 : index
    %0 = vector.load %arg1[%c0, %c0_0] : memref<16x256xbf16, #tpu.memory_space<vmem>>, vector<16x256xbf16>
    %c0_1 = arith.constant 0 : index
    %c0_2 = arith.constant 0 : index
    %1 = vector.load %arg2[%c0_1, %c0_2] : memref<256x256xbf16, #tpu.memory_space<vmem>>, vector<256x256xbf16>
    %cst = arith.constant dense<0.000000e+00> : vector<16x256xf32>
    %2 = tpu.matmul %0, %1, %cst {dimension_numbers = #tpu.dot_dimension_numbers<[1], [0], [0], [1], [0, 0, 1, 1], [], []>} : vector<16x256xbf16>, vector<256x256xbf16>, vector<16x256xf32> -> vector<16x256xf32>
    %c0_3 = arith.constant 0 : index
    %c0_4 = arith.constant 0 : index
    %3 = vector.load %arg3[%c0_3, %c0_4] : memref<1x256xf32, #tpu.memory_space<vmem>>, vector<1x256xf32>
    %4 = vector.broadcast %3 : vector<1x256xf32> to vector<16x256xf32>
    %5 = arith.addf %2, %4 : vector<16x256xf32>
    %cst_5 = arith.constant 5.000000e-01 : f32
    %6 = vector.broadcast %cst_5 : f32 to vector<16x256xf32>
    %7 = arith.mulf %6, %5 : vector<16x256xf32>
    %cst_6 = arith.constant 0.707106769 : f32
    %8 = vector.broadcast %cst_6 : f32 to vector<16x256xf32>
    %9 = arith.mulf %5, %8 : vector<16x256xf32>
    %10 = math.erf %9 : vector<16x256xf32>
    %cst_7 = arith.constant 1.000000e+00 : f32
    %11 = vector.broadcast %cst_7 : f32 to vector<16x256xf32>
    %12 = arith.addf %11, %10 : vector<16x256xf32>
    %13 = arith.mulf %7, %12 : vector<16x256xf32>
    %14 = arith.truncf %13 : vector<16x256xf32> to vector<16x256xbf16>
    %c0_8 = arith.constant 0 : index
    %c0_9 = arith.constant 0 : index
    %15 = vector.load %arg4[%c0_8, %c0_9] : memref<256x256xbf16, #tpu.memory_space<vmem>>, vector<256x256xbf16>
    %cst_10 = arith.constant dense<0.000000e+00> : vector<16x256xf32>
    %16 = tpu.matmul %14, %15, %cst_10 {dimension_numbers = #tpu.dot_dimension_numbers<[1], [0], [0], [1], [0, 0, 1, 1], [], []>} : vector<16x256xbf16>, vector<256x256xbf16>, vector<16x256xf32> -> vector<16x256xf32>
    %c0_11 = arith.constant 0 : index
    %c0_12 = arith.constant 0 : index
    %17 = vector.load %arg5[%c0_11, %c0_12] : memref<1x256xf32, #tpu.memory_space<vmem>>, vector<1x256xf32>
    %18 = vector.broadcast %17 : vector<1x256xf32> to vector<16x256xf32>
    %19 = arith.addf %16, %18 : vector<16x256xf32>
    %c0_13 = arith.constant 0 : index
    %c0_14 = arith.constant 0 : index
    %20 = vector.load %arg6[%c0_13, %c0_14] : memref<16x256xf32, #tpu.memory_space<vmem>>, vector<16x256xf32>
    tpu.vector_store %arg6[%c0_13, %c0_14], %19 {strides = array<i32>} : memref<16x256xf32, #tpu.memory_space<vmem>>, vector<16x256xf32>,
    return
  }
  func.func @transform_0(%arg0: i32) -> (i32, i32) {
    %c0_i32 = arith.constant 0 : i32
    %c0_i32_0 = arith.constant 0 : i32
    return %arg0, %c0_i32 : i32, i32
  }
  func.func @transform_1(%arg0: i32) -> (i32, i32) {
    %c0_i32 = arith.constant 0 : i32
    %c0_i32_0 = arith.constant 0 : i32
    %c0_i32_1 = arith.constant 0 : i32
    return %c0_i32, %c0_i32_0 : i32, i32
  }
  func.func @transform_2(%arg0: i32) -> (i32, i32) {
    %c0_i32 = arith.constant 0 : i32
    %c0_i32_0 = arith.constant 0 : i32
    %c0_i32_1 = arith.constant 0 : i32
    return %c0_i32, %c0_i32_0 : i32, i32
  }
  func.func @transform_3(%arg0: i32) -> (i32, i32) {
    %c0_i32 = arith.constant 0 : i32
    %c0_i32_0 = arith.constant 0 : i32
    %c0_i32_1 = arith.constant 0 : i32
    return %c0_i32, %c0_i32_0 : i32, i32
  }
  func.func @transform_4(%arg0: i32) -> (i32, i32) {
    %c0_i32 = arith.constant 0 : i32
    %c0_i32_0 = arith.constant 0 : i32
    %c0_i32_1 = arith.constant 0 : i32
    return %c0_i32, %c0_i32_0 : i32, i32
  }
  func.func @transform_5(%arg0: i32) -> (i32, i32) {
    %c0_i32 = arith.constant 0 : i32
    %c0_i32_0 = arith.constant 0 : i32
    return %arg0, %c0_i32 : i32, i32
  }
}

</mosaic_0001>

<bundles_post_ra>
// kernel: mlp_block.1
= control target key start
LH: loop header
LB: loop body
LE: loop exit
PB: predicated region body
PF: predicated region fallthrough
CT: control target
= control target key end

     0   :  { %s1670_s1 = inlined_call_operand.vmem [shape: bf16[256,256], index: 1, kind: input, shape index: {}]   ;;  %s1671_s0 = inlined_call_operand.vmem [shape: bf16[16,256], index: 0, kind: input, shape index: {}]   ;;  %s1672_s2 = inlined_call_operand.vmem [shape: f32[1,256], index: 2, kind: input, shape index: {}]   ;;  %s1673_s3 = inlined_call_operand.vmem [shape: bf16[256,256], index: 3, kind: input, shape index: {}]   ;;  %s1674_s4 = inlined_call_operand.vmem [shape: f32[1,256], index: 4, kind: input, shape index: {}]   ;;  %s1675_s5 = inlined_call_operand.vmem [shape: f32[16,256], index: 5, kind: output, shape index: {}]  }
   0x1   :  { %v792_v0 = vld [vmem:[%s1670_s1 + $0x70] sm:$0xf]  ;;  %v1011_v1 = vld [vmem:[%s1670_s1 + $0x74] sm:$0xf0]  ;;  %v1010_v5 = vld [vmem:[%s1670_s1 + $0x74] sm:$0xf] }
   0x2   :  { %v856_v2 = vld [vmem:[%s1670_s1 + $0xf0] sm:$0xf]  ;;  %v793_v3 = vor.u32 %v1011_v1, %v792_v0  ;;  %v1027_v4 = vld [vmem:[%s1670_s1 + $0xf4] sm:$0xf0]  ;;  %v794_v6 = vld [vmem:[%s1670_s1 + $0x78] sm:$0xf0] }
   0x3   :  { %v857_v7 = vor.u32 %v1027_v4, %v856_v2  ;;  %v797_v8 = vor.u32 %v1010_v5, %v794_v6  ;;  %v1026_v9 = vld [vmem:[%s1670_s1 + $0xf4] sm:$0xf]  ;;  %v858_v10 = vld [vmem:[%s1670_s1 + $0xf8] sm:$0xf0]  ;;  %v784_v11 = vld [vmem:[%s1670_s1 + $0x60] sm:$0xf] }
   0x4   :  { %230 = vmatpush.bf16.msra.mxu0 %v793_v3  ;;  %v861_v12 = vor.u32 %v1026_v9, %v858_v10  ;;  %v1009_v13 = vld [vmem:[%s1670_s1 + $0x64] sm:$0xf0]  ;;  %v848_v14 = vld [vmem:[%s1670_s1 + $0xe0] sm:$0xf]  ;;  %v1008_v18 = vld [vmem:[%s1670_s1 + $0x64] sm:$0xf] }
   0x5   :  { %v1025_v15 = vld [vmem:[%s1670_s1 + $0xe4] sm:$0xf0]  ;;  %244 = vmatpush.bf16.msra.mxu1 %v857_v7  ;;  %258 = vmatpush.bf16.msra.mxu2 %v797_v8  ;;  %v785_v16 = vor.u32 %v1009_v13, %v784_v11  ;;  %v786_v19 = vld [vmem:[%s1670_s1 + $0x68] sm:$0xf0]  ;;  %v1024_v20 = vld [vmem:[%s1670_s1 + $0xe4] sm:$0xf] }
   0x6   :  { %v849_v17 = vor.u32 %v1025_v15, %v848_v14  ;;  %272 = vmatpush.bf16.msra.mxu3 %v861_v12  ;;  %v789_v21 = vor.u32 %v1008_v18, %v786_v19  ;;  %v850_v22 = vld [vmem:[%s1670_s1 + $0xe8] sm:$0xf0]  ;;  %v776_v23 = vld [vmem:[%s1670_s1 + $0x50] sm:$0xf]  ;;  %v1007_v24 = vld [vmem:[%s1670_s1 + $0x54] sm:$0xf0] }
   0x7   :  { %v853_v25 = vor.u32 %v1024_v20, %v850_v22  ;;  %v840_v26 = vld [vmem:[%s1670_s1 + $0xd0] sm:$0xf]  ;;  %v1023_v27 = vld [vmem:[%s1670_s1 + $0xd4] sm:$0xf0]  ;;  %v1006_v28 = vld [vmem:[%s1670_s1 + $0x54] sm:$0xf]  ;;  %v777_v29 = vor.u32 %v1007_v24, %v776_v23 }
   0x8   :  { %231 = vmatpush.bf16.msra.mxu0 %v785_v16  ;;  %v778_v30 = vld [vmem:[%s1670_s1 + $0x58] sm:$0xf0]  ;;  %v1022_v31 = vld [vmem:[%s1670_s1 + $0xd4] sm:$0xf]  ;;  %v841_v33 = vor.u32 %v1023_v27, %v840_v26  ;;  %v768_v35 = vld [vmem:[%s1670_s1 + $0x40] sm:$0xf] }
   0x9   :  { %v842_v32 = vld [vmem:[%s1670_s1 + $0xd8] sm:$0xf0]  ;;  %245 = vmatpush.bf16.msra.mxu1 %v849_v17  ;;  %259 = vmatpush.bf16.msra.mxu2 %v789_v21  ;;  %v781_v34 = vor.u32 %v1006_v28, %v778_v30  ;;  %v1005_v36 = vld [vmem:[%s1670_s1 + $0x44] sm:$0xf0]  ;;  %v832_v37 = vld [vmem:[%s1670_s1 + $0xc0] sm:$0xf] }
   0xa   :  { %273 = vmatpush.bf16.msra.mxu3 %v853_v25  ;;  %v845_v38 = vor.u32 %v1022_v31, %v842_v32  ;;  %v1021_v39 = vld [vmem:[%s1670_s1 + $0xc4] sm:$0xf0]  ;;  %v1004_v40 = vld [vmem:[%s1670_s1 + $0x44] sm:$0xf]  ;;  %v770_v41 = vld [vmem:[%s1670_s1 + $0x48] sm:$0xf0]  ;;  %v769_v44 = vor.u32 %v1005_v36, %v768_v35 }
   0xb   :  { %v1020_v42 = vld [vmem:[%s1670_s1 + $0xc4] sm:$0xf]  ;;  %v834_v43 = vld [vmem:[%s1670_s1 + $0xc8] sm:$0xf0]  ;;  %v833_v45 = vor.u32 %v1021_v39, %v832_v37  ;;  %v773_v46 = vor.u32 %v1004_v40, %v770_v41  ;;  %v760_v47 = vld [vmem:[%s1670_s1 + $0x30] sm:$0xf] }
   0xc   :  { %232 = vmatpush.bf16.msra.mxu0 %v777_v29  ;;  %v1003_v48 = vld [vmem:[%s1670_s1 + $0x34] sm:$0xf0]  ;;  %v824_v49 = vld [vmem:[%s1670_s1 + $0xb0] sm:$0xf]  ;;  %v837_v50 = vor.u32 %v1020_v42, %v834_v43  ;;  %v1002_v52 = vld [vmem:[%s1670_s1 + $0x34] sm:$0xf] }
   0xd   :  { %246 = vmatpush.bf16.msra.mxu1 %v841_v33  ;;  %260 = vmatpush.bf16.msra.mxu2 %v781_v34  ;;  %v1019_v51 = vld [vmem:[%s1670_s1 + $0xb4] sm:$0xf0]  ;;  %v762_v53 = vld [vmem:[%s1670_s1 + $0x38] sm:$0xf0]  ;;  %v1018_v54 = vld [vmem:[%s1670_s1 + $0xb4] sm:$0xf]  ;;  %v761_v56 = vor.u32 %v1003_v48, %v760_v47 }
   0xe   :  { %274 = vmatpush.bf16.msra.mxu3 %v845_v38  ;;  %v826_v55 = vld [vmem:[%s1670_s1 + $0xb8] sm:$0xf0]  ;;  %v825_v57 = vor.u32 %v1019_v51, %v824_v49  ;;  %v765_v58 = vor.u32 %v1002_v52, %v762_v53  ;;  %v752_v59 = vld [vmem:[%s1670_s1 + $0x20] sm:$0xf]  ;;  %v1001_v60 = vld [vmem:[%s1670_s1 + $0x24] sm:$0xf0] }
   0xf   :  { %v816_v61 = vld [vmem:[%s1670_s1 + $0xa0] sm:$0xf]  ;;  %v829_v62 = vor.u32 %v1018_v54, %v826_v55  ;;  %v1017_v63 = vld [vmem:[%s1670_s1 + $0xa4] sm:$0xf0]  ;;  %v1000_v0 = vld [vmem:[%s1670_s1 + $0x24] sm:$0xf]  ;;  %v753_v4 = vor.u32 %v1001_v60, %v752_v59 }
  0x10   :  { %233 = vmatpush.bf16.msra.mxu0 %v769_v44  ;;  %v754_v1 = vld [vmem:[%s1670_s1 + $0x28] sm:$0xf0]  ;;  %v1016_v2 = vld [vmem:[%s1670_s1 + $0xa4] sm:$0xf]  ;;  %v817_v5 = vor.u32 %v1017_v63, %v816_v61  ;;  %v744_v7 = vld [vmem:[%s1670_s1 + $0x10] sm:$0xf] }
  0x11   :  { %247 = vmatpush.bf16.msra.mxu1 %v833_v45  ;;  %261 = vmatpush.bf16.msra.mxu2 %v773_v46  ;;  %v818_v3 = vld [vmem:[%s1670_s1 + $0xa8] sm:$0xf0]  ;;  %v757_v6 = vor.u32 %v1000_v0, %v754_v1  ;;  %v999_v8 = vld [vmem:[%s1670_s1 + $0x14] sm:$0xf0]  ;;  %v808_v9 = vld [vmem:[%s1670_s1 + $0x90] sm:$0xf] }
  0x12   :  { %275 = vmatpush.bf16.msra.mxu3 %v837_v50  ;;  %v821_v10 = vor.u32 %v1016_v2, %v818_v3  ;;  %v1015_v11 = vld [vmem:[%s1670_s1 + $0x94] sm:$0xf0]  ;;  %v998_v12 = vld [vmem:[%s1670_s1 + $0x14] sm:$0xf]  ;;  %v746_v13 = vld [vmem:[%s1670_s1 + $0x18] sm:$0xf0]  ;;  %v745_v16 = vor.u32 %v999_v8, %v744_v7 }
  0x13   :  { %v1014_v14 = vld [vmem:[%s1670_s1 + $0x94] sm:$0xf]  ;;  %v810_v15 = vld [vmem:[%s1670_s1 + $0x98] sm:$0xf0]  ;;  %v809_v17 = vor.u32 %v1015_v11, %v808_v9  ;;  %v749_v18 = vor.u32 %v998_v12, %v746_v13  ;;  %v736_v19 = vld [vmem:[%s1670_s1] sm:$0xf] }
  0x14   :  { %234 = vmatpush.bf16.msra.mxu0 %v761_v56  ;;  %v997_v20 = vld [vmem:[%s1670_s1 + $0x4] sm:$0xf0]  ;;  %v800_v21 = vld [vmem:[%s1670_s1 + $0x80] sm:$0xf]  ;;  %v813_v22 = vor.u32 %v1014_v14, %v810_v15  ;;  %v996_v24 = vld [vmem:[%s1670_s1 + $0x4] sm:$0xf] }
  0x15   :  { %248 = vmatpush.bf16.msra.mxu1 %v825_v57  ;;  %262 = vmatpush.bf16.msra.mxu2 %v765_v58  ;;  %v1013_v23 = vld [vmem:[%s1670_s1 + $0x84] sm:$0xf0]  ;;  %v738_v25 = vld [vmem:[%s1670_s1 + $0x8] sm:$0xf0]  ;;  %v1012_v26 = vld [vmem:[%s1670_s1 + $0x84] sm:$0xf]  ;;  %v737_v28 = vor.u32 %v997_v20, %v736_v19 }
  0x16   :  { %276 = vmatpush.bf16.msra.mxu3 %v829_v62  ;;  %v802_v27 = vld [vmem:[%s1670_s1 + $0x88] sm:$0xf0]  ;;  %v728_v29 = vld [vmem:[%s1671_s0] sm:$0xf]  ;;  %v995_v30 = vld [vmem:[%s1671_s0 + $0x4] sm:$0xf0]  ;;  %v801_v31 = vor.u32 %v1013_v23, %v800_v21  ;;  %v741_v32 = vor.u32 %v996_v24, %v738_v25 }
  0x17   :  { %v994_v33 = vld [vmem:[%s1671_s0 + $0x4] sm:$0xf]  ;;  %v730_v34 = vld [vmem:[%s1671_s0 + $0x8] sm:$0xf0]  ;;  %v805_v35 = vor.u32 %v1012_v26, %v802_v27  ;;  %v729_v36 = vor.u32 %v995_v30, %v728_v29  ;;  %v54_v38 = vld [vmem:[%s1672_s2] sm:$0x3] }
  0x18   :  { %235 = vmatpush.bf16.msra.mxu0 %v753_v4  ;;  %v733_v37 = vor.u32 %v994_v33, %v730_v34  ;;  %v56_v39 = vperm.slane %v54_v38, 0  ;;  %v57_v44 = vperm.slane %v54_v38, 1  ;;  %v924_v58 = vld [vmem:[%s1673_s3 + $0x70] sm:$0xf]  ;;  %v1043_v60 = vld [vmem:[%s1673_s3 + $0x74] sm:$0xf0] }
  0x19   :  { %249 = vmatpush.bf16.msra.mxu1 %v817_v5  ;;  %263 = vmatpush.bf16.msra.mxu2 %v757_v6  ;;  %v925_v63 = vor.u32 %v1043_v60, %v924_v58  ;;  %v1042_v2 = vld [vmem:[%s1673_s3 + $0x74] sm:$0xf]  ;;  %v926_v3 = vld [vmem:[%s1673_s3 + $0x78] sm:$0xf0]  ;;  %v916_v8 = vld [vmem:[%s1673_s3 + $0x60] sm:$0xf] }
  0x1a   :  { %277 = vmatpush.bf16.msra.mxu3 %v821_v10  ;;  %v929_v7 = vor.u32 %v1042_v2, %v926_v3  ;;  %v1041_v9 = vld [vmem:[%s1673_s3 + $0x64] sm:$0xf0]  ;;  %v1040_v10 = vld [vmem:[%s1673_s3 + $0x64] sm:$0xf]  ;;  %v918_v15 = vld [vmem:[%s1673_s3 + $0x68] sm:$0xf0] }
  0x1b   :  { %v917_v14 = vor.u32 %v1041_v9, %v916_v8  ;;  %v988_v19 = vld [vmem:[%s1673_s3 + $0xf0] sm:$0xf]  ;;  %v1059_v27 = vld [vmem:[%s1673_s3 + $0xf4] sm:$0xf0]  ;;  %v990_v29 = vld [vmem:[%s1673_s3 + $0xf8] sm:$0xf0] }
  0x1c   :  { %236 = vmatpush.bf16.msra.mxu0 %v745_v16  ;;  %v989_v33 = vor.u32 %v1059_v27, %v988_v19  ;;  %v910_v60 = vld [vmem:[%s1673_s3 + $0x58] sm:$0xf0]  ;;  %v1057_v2 = vld [vmem:[%s1673_s3 + $0xe4] sm:$0xf0] }
  0x1d   :  { %250 = vmatpush.bf16.msra.mxu1 %v809_v17  ;;  %264 = vmatpush.bf16.msra.mxu2 %v749_v18  ;;  %v921_v18 = vor.u32 %v1040_v10, %v918_v15 }
  0x1e   :  { %278 = vmatpush.bf16.msra.mxu3 %v813_v22 }
  0x20   :  { %237 = vmatpush.bf16.msra.mxu0 %v737_v28  ;;  %v1058_v28 = vld [vmem:[%s1673_s3 + $0xf4] sm:$0xf] }
  0x21   :  { %251 = vmatpush.bf16.msra.mxu1 %v801_v31  ;;  %265 = vmatpush.bf16.msra.mxu2 %v741_v32 }
  0x22   :  { %279 = vmatpush.bf16.msra.mxu3 %v805_v35 }
  0x23   :  { %238 = vmatmul.bf16.vlgmr.msra.gmra.mxu0 %v729_v36 }
  0x24   :  { %252 = vmatmul.bf16.vlgmr.msra.gmra.mxu1 %v733_v37  ;;  %266 = vmatmul.bf16.vlgmr.msra.gmra.mxu2 %v729_v36 }
  0x25   :  { %280 = vmatmul.bf16.vlgmr.msra.gmra.mxu3 %v733_v37  ;;  %662 = vmatpush.bf16.msrb.mxu0 %v925_v63  ;;  %v993_v37 = vor.u32 %v1058_v28, %v990_v29  ;;  %v1036_v29 = vld [vmem:[%s1673_s3 + $0x44] sm:$0xf] }
  0x26   :  { %690 = vmatpush.bf16.msrb.mxu2 %v929_v7  ;;  %676 = vmatpush.bf16.msrb.mxu1 %v989_v33 }
  0x27   :  { %704 = vmatpush.bf16.msrb.mxu3 %v993_v37  ;;  %v1055_v37 = vld [vmem:[%s1673_s3 + $0xd4] sm:$0xf0] }
  0x29   :  { %663 = vmatpush.bf16.msrb.mxu0 %v917_v14 }
  0x2a   :  { %691 = vmatpush.bf16.msrb.mxu2 %v921_v18 }
  0xa0   :  { %v239_v40 = vpop.f32.mrf.mxu0 }
  0xa1   :  { %v240_v41 = vadd.f32 %v239_v40, %v56_v39  ;;  %v253_v42 = vpop.f32.mrf.mxu1  ;;  %v908_v40 = vld [vmem:[%s1673_s3 + $0x50] sm:$0xf] }
  0xa3   :  { %v1305_v43 = vadd.f32 %v253_v42, %v240_v41 }
  0xa5   :  { %v1308_v45 = vmul.f32 0.70710677, %v1305_v43 }
  0xa7   :  { %v294_v46 = vmul.f32 %v1308_v45, %v1308_v45  ;;  %v267_v47 = vpop.f32.mrf.mxu2 }
  0xa8   :  { %v268_v48 = vadd.f32 %v267_v47, %v57_v44  ;;  %v281_v49 = vpop.f32.mrf.mxu3  ;;  %v241_v50 = vpop.f32.mrf.mxu0  ;;  %v1039_v47 = vld [vmem:[%s1673_s3 + $0x54] sm:$0xf0] }
  0xa9   :  { %v1312_v51 = vmin.f32 %v294_v46, 16.0  ;;  %v242_v52 = vadd.f32 %v241_v50, %v56_v39  ;;  %v255_v54 = vpop.f32.mrf.mxu1 }
  0xaa   :  { %v1314_v53 = vadd.f32 %v281_v49, %v268_v48 }
  0xab   :  { %v296_v55 = vmul.f32 2.1237322e-06, %v1312_v51  ;;  %v307_v56 = vmul.f32 3.8918573e-05, %v1312_v51  ;;  %v1318_v57 = vadd.f32 %v255_v54, %v242_v52  ;;  %v909_v52 = vor.u32 %v1039_v47, %v908_v40  ;;  %v1038_v54 = vld [vmem:[%s1673_s3 + $0x54] sm:$0xf] }
  0xac   :  { %v1324_v59 = vmul.f32 0.70710677, %v1314_v53  ;;  %v913_v63 = vor.u32 %v1038_v54, %v910_v60  ;;  %v1035_v60 = vld [vmem:[%s1673_s3 + $0x34] sm:$0xf0] }
  0xad   :  { %v297_v61 = vadd.f32 0.00028619796, %v296_v55  ;;  %v308_v62 = vadd.f32 0.001143296, %v307_v56  ;;  %v1332_v1 = vmul.f32 0.70710677, %v1318_v57  ;;  %664 = vmatpush.bf16.msrb.mxu0 %v909_v52 }
  0xae   :  { %v334_v0 = vmul.f32 %v1324_v59, %v1324_v59  ;;  %692 = vmatpush.bf16.msrb.mxu2 %v913_v63 }
  0xaf   :  { %v298_v4 = vmul.f32 %v297_v61, %v1312_v51  ;;  %v309_v5 = vmul.f32 %v308_v62, %v1312_v51  ;;  %v269_v6 = vpop.f32.mrf.mxu2  ;;  %v374_v12 = vmul.f32 %v1332_v1, %v1332_v1 }
  0xb0   :  { %v1351_v11 = vmin.f32 %v334_v0, 16.0  ;;  %v270_v13 = vadd.f32 %v269_v6, %v57_v44  ;;  %v283_v23 = vpop.f32.mrf.mxu3  ;;  %v980_v0 = vld [vmem:[%s1673_s3 + $0xe0] sm:$0xf] }
  0xb1   :  { %v299_v16 = vadd.f32 0.0036580483, %v298_v4  ;;  %v310_v17 = vadd.f32 0.014752088, %v309_v5  ;;  %v1363_v22 = vmin.f32 %v374_v12, 16.0  ;;  %v981_v9 = vor.u32 %v1057_v2, %v980_v0 }
  0xb2   :  { %v336_v20 = vmul.f32 2.1237322e-06, %v1351_v11  ;;  %v347_v21 = vmul.f32 3.8918573e-05, %v1351_v11  ;;  %v1367_v26 = vadd.f32 %v283_v23, %v270_v13  ;;  %v900_v23 = vld [vmem:[%s1673_s3 + $0x40] sm:$0xf] }
  0xb3   :  { %v300_v24 = vmul.f32 %v299_v16, %v1312_v51  ;;  %v311_v25 = vmul.f32 %v310_v17, %v1312_v51  ;;  %v376_v32 = vmul.f32 2.1237322e-06, %v1363_v22  ;;  %v387_v36 = vmul.f32 3.8918573e-05, %v1363_v22  ;;  %677 = vmatpush.bf16.msrb.mxu1 %v981_v9  ;;  %v1056_v16 = vld [vmem:[%s1673_s3 + $0xe4] sm:$0xf] }
  0xb4   :  { %v337_v30 = vadd.f32 0.00028619796, %v336_v20  ;;  %v348_v31 = vadd.f32 0.001143296, %v347_v21  ;;  %v1387_v46 = vmul.f32 0.70710677, %v1367_v26 }
  0xb5   :  { %v301_v34 = vadd.f32 0.05243302, %v300_v24  ;;  %v312_v35 = vadd.f32 0.112945676, %v311_v25  ;;  %v377_v39 = vadd.f32 0.00028619796, %v376_v32 }
  0xb6   :  { %v349_v38 = vmul.f32 %v348_v31, %v1351_v11  ;;  %v338_v42 = vmul.f32 %v337_v30, %v1351_v11  ;;  %v388_v44 = vadd.f32 0.001143296, %v387_v36  ;;  %v414_v58 = vmul.f32 %v1387_v46, %v1387_v46  ;;  %v982_v17 = vld [vmem:[%s1673_s3 + $0xe8] sm:$0xf0]  ;;  %v1037_v24 = vld [vmem:[%s1673_s3 + $0x44] sm:$0xf0] }
  0xb7   :  { %v313_v41 = vmul.f32 %v312_v35, %v1312_v51  ;;  %v302_v48 = vmul.f32 %v301_v34, %v1312_v51  ;;  %v378_v50 = vmul.f32 %v377_v39, %v1363_v22  ;;  %v985_v28 = vor.u32 %v1056_v16, %v982_v17  ;;  %v902_v31 = vld [vmem:[%s1673_s3 + $0x48] sm:$0xf0]  ;;  %v972_v36 = vld [vmem:[%s1673_s3 + $0xd0] sm:$0xf] }
  0xb8   :  { %v350_v49 = vadd.f32 0.014752088, %v349_v38  ;;  %v389_v56 = vmul.f32 %v388_v44, %v1363_v22  ;;  %v1411_v5 = vmin.f32 %v414_v58, 16.0  ;;  %v339_v7 = vadd.f32 0.0036580483, %v338_v42 }
  0xb9   :  { %v314_v55 = vadd.f32 0.4994258, %v313_v41  ;;  %v379_v62 = vadd.f32 0.0036580483, %v378_v50  ;;  %v303_v6 = vadd.f32 0.18741608, %v302_v48  ;;  %705 = vmatpush.bf16.msrb.mxu3 %v985_v28  ;;  %v901_v35 = vor.u32 %v1037_v24, %v900_v23 }
  0xba   :  { %v351_v61 = vmul.f32 %v350_v49, %v1351_v11  ;;  %v390_v4 = vadd.f32 0.014752088, %v389_v56  ;;  %v416_v13 = vmul.f32 2.1237322e-06, %v1411_v5  ;;  %v427_v18 = vmul.f32 3.8918573e-05, %v1411_v5 }
  0xbb   :  { %v315_v3 = vmul.f32 %v314_v55, %v1312_v51  ;;  %v380_v15 = vmul.f32 %v379_v62, %v1363_v22  ;;  %v304_v19 = vmul.f32 %v303_v6, %v1312_v51  ;;  %v340_v20 = vmul.f32 %v339_v7, %v1351_v11  ;;  %665 = vmatpush.bf16.msrb.mxu0 %v901_v35  ;;  %v1054_v55 = vld [vmem:[%s1673_s3 + $0xd4] sm:$0xf]  ;;  %v974_v56 = vld [vmem:[%s1673_s3 + $0xd8] sm:$0xf0]  ;;  %v892_v58 = vld [vmem:[%s1673_s3 + $0x30] sm:$0xf] }
  0xbc   :  { %v352_v8 = vadd.f32 0.112945676, %v351_v61  ;;  %v391_v12 = vmul.f32 %v390_v4, %v1363_v22  ;;  %v417_v27 = vadd.f32 0.00028619796, %v416_v13  ;;  %v428_v34 = vadd.f32 0.001143296, %v427_v18 }
  0xbd   :  { %v1413_v10 = vadd.f32 1.0, %v315_v3  ;;  %v381_v30 = vadd.f32 0.05243302, %v380_v15  ;;  %v1450_v38 = vadd.f32 1.1283791, %v304_v19  ;;  %v905_v41 = vor.u32 %v1036_v29, %v902_v31 }
  0xbe   :  { %v353_v14 = vmul.f32 %v352_v8, %v1351_v11  ;;  %v392_v25 = vadd.f32 0.112945676, %v391_v12  ;;  %v418_v33 = vmul.f32 %v417_v27, %v1411_v5  ;;  %v341_v39 = vadd.f32 0.05243302, %v340_v20  ;;  %v1034_v61 = vld [vmem:[%s1673_s3 + $0x34] sm:$0xf] }
  0xbf   :  { %1060 = vrcp.f32 %v1413_v10  ;;  %v326_v44 = vand.u32 2147483647, %v1413_v10  ;;  %v429_v48 = vmul.f32 %v428_v34, %v1411_v5  ;;  %v973_v49 = vor.u32 %v1055_v37, %v972_v36  ;;  %693 = vmatpush.bf16.msrb.mxu2 %v905_v41  ;;  %v894_v3 = vld [vmem:[%s1673_s3 + $0x38] sm:$0xf0]  ;;  %v964_v7 = vld [vmem:[%s1673_s3 + $0xc0] sm:$0xf] }
  0xc0   :  { %v354_v21 = vadd.f32 0.4994258, %v353_v14  ;;  %v393_v32 = vmul.f32 %v392_v25, %v1363_v22  ;;  %v382_v52 = vmul.f32 %v381_v30, %v1363_v22  ;;  %v419_v54 = vadd.f32 0.0036580483, %v418_v33  ;;  %v1053_v8 = vld [vmem:[%s1673_s3 + $0xc4] sm:$0xf0] }
  0xc1   :  { %678 = vmatpush.bf16.msrb.mxu1 %v973_v49  ;;  %v342_v63 = vmul.f32 %v341_v39, %v1351_v11  ;;  %v430_v2 = vadd.f32 0.014752088, %v429_v48  ;;  %v328_v4 = vand.u32 2147483648, %v1413_v10  ;;  %v977_v6 = vor.u32 %v1054_v55, %v974_v56  ;;  %v1052_v19 = vld [vmem:[%s1673_s3 + $0xc4] sm:$0xf] }
  0xc2   :  { %v355_v51 = vmul.f32 %v354_v21, %v1351_v11  ;;  %v394_v47 = vadd.f32 0.4994258, %v393_v32  ;;  %v383_v12 = vadd.f32 0.18741608, %v382_v52  ;;  %v420_v15 = vmul.f32 %v419_v54, %v1411_v5  ;;  %v966_v20 = vld [vmem:[%s1673_s3 + $0xc8] sm:$0xf0] }
  0xc3   :  { %v431_v14 = vmul.f32 %v430_v2, %v1411_v5  ;;  %706 = vmatpush.bf16.msrb.mxu3 %v977_v6  ;;  %v893_v16 = vor.u32 %v1035_v60, %v892_v58  ;;  %v897_v17 = vor.u32 %v1034_v61, %v894_v3  ;;  %v965_v18 = vor.u32 %v1053_v8, %v964_v7  ;;  %v884_v25 = vld [vmem:[%s1673_s3 + $0x20] sm:$0xf]  ;;  %v1033_v27 = vld [vmem:[%s1673_s3 + $0x24] sm:$0xf0]  ;;  %v1032_v29 = vld [vmem:[%s1673_s3 + $0x24] sm:$0xf] }
  0xc4   :  { %v1452_v40 = vadd.f32 1.0, %v355_v51  ;;  %v395_v0 = vmul.f32 %v394_v47, %v1363_v22  ;;  %v343_v24 = vadd.f32 0.18741608, %v342_v63  ;;  %v886_v51 = vld [vmem:[%s1673_s3 + $0x28] sm:$0xf0]  ;;  %vm322_vm1 = vweird.f32 %v1413_v10 }
  0xc5   :  { %v1454_v42 = vpop.eup %1060  ;;  %666 = vmatpush.bf16.msrb.mxu0 %v893_v16  ;;  %694 = vmatpush.bf16.msrb.mxu2 %v897_v17  ;;  %v956_v30 = vld [vmem:[%s1673_s3 + $0xb0] sm:$0xf]  ;;  %v432_v31 = vadd.f32 0.112945676, %v431_v14  ;;  %v969_v32 = vor.u32 %v1052_v19, %v966_v20  ;;  %v1051_v33 = vld [vmem:[%s1673_s3 + $0xb4] sm:$0xf0]  ;;  %v384_v39 = vmul.f32 %v383_v12, %v1363_v22  ;;  %v889_v52 = vor.u32 %v1032_v29, %v886_v51 }
  0xc6   :  { %v318_v50 = vmul.f32 %v1454_v42, %v1413_v10  ;;  %1062 = vrcp.f32 %v1452_v40  ;;  %v1490_v13 = vadd.f32 1.0, %v395_v0  ;;  %vm323_vm0 = vweird.f32 %v1454_v42  ;;  %679 = vmatpush.bf16.msrb.mxu1 %v965_v18  ;;  %v1050_v34 = vld [vmem:[%s1673_s3 + $0xb4] sm:$0xf]  ;;  %v958_v47 = vld [vmem:[%s1673_s3 + $0xb8] sm:$0xf0] }
  0xc7   :  { %vm1531_vm2 = vmor %vm322_vm1, %vm323_vm0  ;;  %v329_v36 = vor.u32 1.1754944e-38, %v328_v4  ;;  %v421_v41 = vadd.f32 0.05243302, %v420_v15  ;;  %v433_v49 = vmul.f32 %v432_v31, %v1411_v5  ;;  %707 = vmatpush.bf16.msrb.mxu3 %v969_v32  ;;  %v876_v54 = vld [vmem:[%s1673_s3 + $0x10] sm:$0xf]  ;;  %v957_v56 = vor.u32 %v1051_v33, %v956_v30 }
  0xc8   :  { %v319_v62 = vsub.f32 1.0, %v318_v50  ;;  %1064 = vrcp.f32 %v1490_v13  ;;  %v885_v50 = vor.u32 %v1033_v27, %v884_v25  ;;  %v1031_v22 = vld [vmem:[%s1673_s3 + $0x14] sm:$0xf0]  ;;  %v1030_v55 = vld [vmem:[%s1673_s3 + $0x14] sm:$0xf]  ;;  %v961_v58 = vor.u32 %v1050_v34, %v958_v47 }
  0xc9   :  { %v948_v60 = vld [vmem:[%s1673_s3 + $0xa0] sm:$0xf]  ;;  %v1049_v61 = vld [vmem:[%s1673_s3 + $0xa4] sm:$0xf0]  ;;  %vm327_vm3 = vcmp.eq.f32.partialorder %v326_v44, 8.507059e+37  ;;  %695 = vmatpush.bf16.msrb.mxu2 %v889_v52  ;;  %v877_v0 = vor.u32 %v1031_v22, %v876_v54  ;;  %v306_v4 = vmul.f32 %v1450_v38, %v1308_v45  ;;  %v344_v16 = vmul.f32 %v343_v24, %v1351_v11 }
  0xca   :  { %v320_v9 = vmul.f32 %v1454_v42, %v319_v62  ;;  %v434_v63 = vadd.f32 0.4994258, %v433_v49  ;;  %667 = vmatpush.bf16.msrb.mxu0 %v885_v50  ;;  %v1048_v3 = vld [vmem:[%s1673_s3 + $0xa4] sm:$0xf]  ;;  %v385_v7 = vadd.f32 1.1283791, %v384_v39  ;;  %680 = vmatpush.bf16.msrb.mxu1 %v957_v56  ;;  %v949_v45 = vor.u32 %v1049_v61, %v948_v60 }
  0xcb   :  { %v950_v10 = vld [vmem:[%s1673_s3 + $0xa8] sm:$0xf0]  ;;  %v868_v44 = vld [vmem:[%s1673_s3] sm:$0xf]  ;;  %708 = vmatpush.bf16.msrb.mxu3 %v961_v58  ;;  %v1029_v14 = vld [vmem:[%s1673_s3 + $0x4] sm:$0xf0]  ;;  %v422_v19 = vmul.f32 %v421_v41, %v1411_v5  ;;  %vm362_vm5 = vweird.f32 %v1452_v40  ;;  %vm402_vm7 = vweird.f32 %v1490_v13 }
  0xcc   :  { %v1500_v21 = vpop.eup %1062  ;;  %v321_v23 = vadd.f32 %v1454_v42, %v320_v9  ;;  %v435_v12 = vmul.f32 %v434_v63, %v1411_v5  ;;  %v953_v38 = vor.u32 %v1048_v3, %v950_v10  ;;  %v1028_v15 = vld [vmem:[%s1673_s3 + $0x4] sm:$0xf]  ;;  %v408_v18 = vand.u32 2147483648, %v1490_v13  ;;  %v870_v20 = vld [vmem:[%s1673_s3 + $0x8] sm:$0xf0] }
  0xcd   :  { %v358_v28 = vmul.f32 %v1500_v21, %v1452_v40  ;;  %v873_v11 = vor.u32 %v1028_v15, %v870_v20  ;;  %v1047_v24 = vld [vmem:[%s1673_s3 + $0x94] sm:$0xf0]  ;;  %v1046_v29 = vld [vmem:[%s1673_s3 + $0x94] sm:$0xf]  ;;  %v406_v30 = vand.u32 2147483647, %v1490_v13  ;;  %vm363_vm6 = vweird.f32 %v1500_v21 }
  0xce   :  { %v325_v48 = vsel %vm1531_vm2, %v1454_v42, %v321_v23  ;;  %v878_v42 = vld [vmem:[%s1673_s3 + $0x18] sm:$0xf0]  ;;  %v1561_v62 = vpop.eup %1064  ;;  %v940_v23 = vld [vmem:[%s1673_s3 + $0x90] sm:$0xf]  ;;  %v1595_v27 = vadd.f32 1.0, %v435_v12  ;;  %668 = vmatpush.bf16.msrb.mxu0 %v877_v0  ;;  %681 = vmatpush.bf16.msrb.mxu1 %v949_v45  ;;  %v409_v50 = vor.u32 1.1754944e-38, %v408_v18  ;;  %vm1635_vm9 = vmor %vm362_vm5, %vm363_vm6  ;;  %v386_v54 = vmul.f32 %v385_v7, %v1332_v1 }
  0xcf   :  { %v359_v37 = vsub.f32 1.0, %v358_v28  ;;  %v881_v2 = vor.u32 %v1030_v55, %v878_v42  ;;  %v330_v6 = vsel %vm327_vm3, %v329_v36, %v325_v48  ;;  %v398_v8 = vmul.f32 %v1561_v62, %v1490_v13  ;;  %v942_v32 = vld [vmem:[%s1673_s3 + $0x98] sm:$0xf0]  ;;  %709 = vmatpush.bf16.msrb.mxu3 %v953_v38  ;;  %v932_v34 = vld [vmem:[%s1673_s3 + $0x80] sm:$0xf] }
  0xd0   :  { %v331_v25 = vmul.f32 %v330_v6, %v306_v4  ;;  %v869_v28 = vor.u32 %v1029_v14, %v868_v44  ;;  %vm403_vm4 = vweird.f32 %v1561_v62  ;;  %v941_v31 = vor.u32 %v1047_v24, %v940_v23  ;;  %v1045_v35 = vld [vmem:[%s1673_s3 + $0x84] sm:$0xf0]  ;;  %v1044_v41 = vld [vmem:[%s1673_s3 + $0x84] sm:$0xf]  ;;  %v934_v47 = vld [vmem:[%s1673_s3 + $0x88] sm:$0xf0] }
  0xd1   :  { %v360_v9 = vmul.f32 %v1500_v21, %v359_v37  ;;  %v399_v17 = vsub.f32 1.0, %v398_v8  ;;  %696 = vmatpush.bf16.msrb.mxu2 %v881_v2  ;;  %1066 = vrcp.f32 %v1595_v27  ;;  %v368_v36 = vand.u32 2147483648, %v1452_v40  ;;  %vm404_vm8 = vmor %vm402_vm7, %vm403_vm4 }
  0xd2   :  { %v945_v39 = vor.u32 %v1046_v29, %v942_v32  ;;  %v862_v48 = vclamps-f32 %v331_v25, 1.0  ;;  %v366_v49 = vand.u32 2147483647, %v1452_v40  ;;  %v423_v52 = vadd.f32 0.18741608, %v422_v19  ;;  %669 = vmatpush.bf16.msrb.mxu0 %v869_v28  ;;  %682 = vmatpush.bf16.msrb.mxu1 %v941_v31 }
  0xd3   :  { %v400_v51 = vmul.f32 %v1561_v62, %v399_v17  ;;  %v361_v33 = vadd.f32 %v1500_v21, %v360_v9  ;;  %vm407_vm10 = vcmp.eq.f32.partialorder %v406_v30, 8.507059e+37  ;;  %v933_v55 = vor.u32 %v1045_v35, %v932_v34 }
  0xd4   :  { %v345_v56 = vadd.f32 1.1283791, %v344_v16  ;;  %710 = vmatpush.bf16.msrb.mxu3 %v945_v39  ;;  %v937_v60 = vor.u32 %v1044_v41, %v934_v47  ;;  %v369_v40 = vor.u32 1.1754944e-38, %v368_v36  ;;  %v454_v0 = vadd.f32 1.0, %v862_v48 }
  0xd5   :  { %v401_v37 = vadd.f32 %v1561_v62, %v400_v51  ;;  %697 = vmatpush.bf16.msrb.mxu2 %v873_v11  ;;  %v365_v58 = vsel %vm1635_vm9, %v1500_v21, %v361_v33  ;;  %vm367_vm11 = vcmp.eq.f32.partialorder %v366_v49, 8.507059e+37  ;;  %v424_v1 = vmul.f32 %v423_v52, %v1411_v5 }
  0xd6   :  { %v370_v2 = vsel %vm367_vm11, %v369_v40, %v365_v58  ;;  %683 = vmatpush.bf16.msrb.mxu1 %v933_v55  ;;  %v286_v4 = vmul.f32 0.5, %v1305_v43  ;;  %v346_v6 = vmul.f32 %v345_v56, %v1324_v59  ;;  %v288_v21 = vmul.f32 0.5, %v1318_v57 }
  0xd7   :  { %v405_v22 = vsel %vm404_vm8, %v1561_v62, %v401_v37  ;;  %v1067_v63 = vpop.eup %1066  ;;  %v425_v9 = vadd.f32 1.1283791, %v424_v1  ;;  %v448_v12 = vand.u32 2147483648, %v1595_v27  ;;  %v446_v38 = vand.u32 2147483647, %v1595_v27 }
  0xd8   :  { %v410_v42 = vsel %vm407_vm10, %v409_v50, %v405_v22  ;;  %v438_v3 = vmul.f32 %v1067_v63, %v1595_v27  ;;  %711 = vmatpush.bf16.msrb.mxu3 %v937_v60  ;;  %v458_v10 = vmul.f32 %v454_v0, %v286_v4  ;;  %v371_v44 = vmul.f32 %v370_v2, %v346_v6 }
  0xd9   :  { %v411_v61 = vmul.f32 %v410_v42, %v386_v54  ;;  %vm443_vm12 = vweird.f32 %v1067_v63  ;;  %vm442_vm13 = vweird.f32 %v1595_v27  ;;  %v449_v59 = vor.u32 1.1754944e-38, %v448_v12 }
  0xda   :  { %v439_v8 = vsub.f32 1.0, %v438_v3  ;;  %vm444_vm14 = vmor %vm442_vm13, %vm443_vm12  ;;  %v863_v15 = vclamps-f32 %v371_v44, 1.0  ;;  %v426_v57 = vmul.f32 %v425_v9, %v1387_v46  ;;  %vm447_vm15 = vcmp.eq.f32.partialorder %v446_v38, 8.507059e+37  ;;  %v496_v46 = vld [vmem:[%s1674_s4] sm:$0x3] }
  0xdb   :  { %v864_v62 = vclamps-f32 %v411_v61, 1.0  ;;  %v287_v23 = vmul.f32 0.5, %v1314_v53  ;;  %v289_v25 = vmul.f32 0.5, %v1367_v26  ;;  %v498_v51 = vperm.slane %v496_v46, 0 }
  0xdc   :  { %v440_v45 = vmul.f32 %v1067_v63, %v439_v8  ;;  %v455_v19 = vadd.f32 1.0, %v863_v15  ;;  %v499_v34 = vperm.slane %v496_v46, 1 }
  0xdd   :  { %v456_v7 = vadd.f32 1.0, %v864_v62 }
  0xde   :  { %v441_v14 = vadd.f32 %v1067_v63, %v440_v45  ;;  %v459_v27 = vmul.f32 %v455_v19, %v287_v23 }
  0xdf   :  { %v460_v5 = vmul.f32 %v456_v7, %v288_v21 }
  0xe0   :  { %v445_v16 = vsel %vm444_vm14, %v1067_v63, %v441_v14 }
  0xe1   :  { %v462_v43 = vpack.c.bf16 %v460_v5, %v458_v10  ;;  %v450_v17 = vsel %vm447_vm15, %v449_v59, %v445_v16 }
  0xe2   :  { %v451_v18 = vmul.f32 %v450_v17, %v426_v57 }
  0xe3   :  { %670 = vmatmul.bf16.vlgmr.msrb.gmra.mxu0 %v462_v43  ;;  %698 = vmatmul.bf16.vlgmr.msrb.gmra.mxu2 %v462_v43 }
  0xe4   :  { %v865_v20 = vclamps-f32 %v451_v18, 1.0 }
  0xe6   :  { %v457_v28 = vadd.f32 1.0, %v865_v20 }
  0xe8   :  { %v461_v11 = vmul.f32 %v457_v28, %v289_v25 }
  0xea   :  { %v463_v24 = vpack.c.bf16 %v461_v11, %v459_v27 }
  0xec   :  { %684 = vmatmul.bf16.vlgmr.msrb.gmra.mxu1 %v463_v24  ;;  %712 = vmatmul.bf16.vlgmr.msrb.gmra.mxu3 %v463_v24 }
 0x160   :  { %v671_v29 = vpop.f32.mrf.mxu0 }
 0x161   :  { %v672_v30 = vadd.f32 %v671_v29, %v498_v51 }
 0x166   :  { %v699_v32 = vpop.f32.mrf.mxu2 }
 0x167   :  { %v700_v26 = vadd.f32 %v699_v32, %v499_v34 }
 0x168   :  { %v673_v53 = vpop.f32.mrf.mxu0 }
 0x169   :  { %v685_v31 = vpop.f32.mrf.mxu1  ;;  %v674_v36 = vadd.f32 %v673_v53, %v498_v51 }
 0x16a   :  { %v686_v33 = vadd.f32 %v685_v31, %v672_v30 }
 0x16c   :  { %718 = vst [vmem:[%s1675_s5] sm:$0xff] %v686_v33 }
 0x16e   :  { %v701_v47 = vpop.f32.mrf.mxu2 }
 0x16f   :  { %v713_v35 = vpop.f32.mrf.mxu3  ;;  %v702_v48 = vadd.f32 %v701_v47, %v499_v34 }
 0x170   :  { %v714_v37 = vadd.f32 %v713_v35, %v700_v26 }
 0x171   :  { %v687_v39 = vpop.f32.mrf.mxu1 }
 0x172   :  { %719 = vst [vmem:[%s1675_s5 + $0x8] sm:$0xff] %v714_v37  ;;  %v688_v41 = vadd.f32 %v687_v39, %v674_v36 }
 0x174   :  { %720 = vst [vmem:[%s1675_s5 + $0x10] sm:$0xff] %v688_v41 }
 0x177   :  { %v715_v49 = vpop.f32.mrf.mxu3 }
 0x178   :  { %v716_v50 = vadd.f32 %v715_v49, %v702_v48 }
 0x17a   :  { %721 = vst [vmem:[%s1675_s5 + $0x18] sm:$0xff] %v716_v50 }

</bundles_post_ra>
